<compile_context>
chip_gen: v7x
topology: tpu7x:2x2x1
jax: 0.10.0
libtpu: 0.0.40
codegen_flags: <defaults>
</compile_context>

<pallas_src>
import jax
import jax.numpy as jnp
from jax.experimental import pallas as pl
from jax.experimental.pallas import tpu as pltpu


def _make_kernel(Ho, Wo, C_out, kH, kW, stride, Hd):
    s = stride

    def kernel(x_ref, w1_ref, w2_ref, bf_ref, o_ref):
        # x_ref : (s*s*Hd, Wd, C_out)  phase-decomposed, zero-padded,
        #                              channel-expanded input for one batch
        #                              element; phase ph lives in rows
        #                              [ph*Hd, (ph+1)*Hd).
        # w1_ref: (kH*kW, C_out)       depthwise weight, one row per tap
        # w2_ref: (C_out, C_out)       1x1 conv weight, pre-transposed (y = x @ w2)
        # bf_ref: (1, C_out)           fused bias: b_dw @ w2 + b_pw
        # o_ref : (Ho*Wo, C_out)

        w1 = w1_ref[...]                                   # hoisted, VMEM-resident
        acc = jnp.zeros((Ho, Wo, C_out), dtype=jnp.float32)

        # ---- depthwise conv: k*k-tap VPU multiply-accumulate (fp32) ----
        for ky in range(kH):
            for kx in range(kW):
                t = ky * kW + kx
                ph = (ky % s) * s + (kx % s)               # stride phase of this tap
                oy, ox = ky // s, kx // s                  # offset inside the phase
                tap = x_ref[pl.ds(ph * Hd + oy, Ho), pl.ds(ox, Wo), :]  # (Ho,Wo,C)
                acc = acc + tap * w1[t]

        # ---- pointwise (1x1) conv: single MXU matmul over K = C_out ----
        y = jnp.dot(acc.reshape(Ho * Wo, C_out), w2_ref[...],
                    preferred_element_type=jnp.float32)
        o_ref[...] = y + bf_ref[...]

    return kernel


def depthwise_conv2d_forward(x, w_dw, b_dw, w_pw, b_pw, *, kernel_size, padding, stride):
    """Forward pass of PiT's DepthWiseConv2d.

    x     : (B, C_in, H, W)        NCHW (same layout as the PyTorch module)
    w_dw  : (C_out, 1, k, k)       grouped Conv2d weight (groups = C_in)
    b_dw  : (C_out,)
    w_pw  : (C_out, C_out, 1, 1)   1x1 Conv2d weight
    b_pw  : (C_out,)
    returns (B, C_out, Ho, Wo)     NCHW
    """
    B, C_in, H, W = x.shape
    C_out = w_dw.shape[0]
    kH = kW = int(kernel_size)
    p, s = int(padding), int(stride)
    assert C_out % C_in == 0, "groups=C_in requires C_out to be a multiple of C_in"
    m = C_out // C_in
    assert w_dw.shape == (C_out, 1, kH, kW)
    assert w_pw.shape == (C_out, C_out, 1, 1)

    Ho = (H + 2 * p - kH) // s + 1
    Wo = (W + 2 * p - kW) // s + 1
    Hp, Wp = H + 2 * p, W + 2 * p
    # per-phase spatial extent needed so every tap window is unit-stride
    Hd = (kH - 1) // s + Ho
    Wd = (kW - 1) // s + Wo
    Ht, Wt = s * Hd, s * Wd

    # ---- wrapper-side layout plumbing (loop-invariant, done once by XLA) ----
    x_nhwc = jnp.transpose(x, (0, 2, 3, 1)).astype(jnp.float32)        # (B,H,W,Cin)
    x_pad = jnp.pad(x_nhwc, ((0, 0), (p, p), (p, p), (0, 0)))          # (B,Hp,Wp,Cin)
    # expand grouped channels: expanded channel o reads input channel o // m
    x_exp = jnp.repeat(x_pad, m, axis=-1) if m > 1 else x_pad          # (B,Hp,Wp,Cout)

    # bring spatial extent to exactly (s*Hd, s*Wd); the extra rows/cols (if any)
    # are never read by any valid tap window
    if Ht > Hp or Wt > Wp:
        x_exp = jnp.pad(x_exp, ((0, 0), (0, max(0, Ht - Hp)),
                                (0, max(0, Wt - Wp)), (0, 0)))
    x_exp = x_exp[:, :Ht, :Wt, :]

    # stride-phase decomposition: (B, Ht, Wt, C) -> (B, s*s*Hd, Wd, C)
    # row index = (py*s + px) * Hd + i  with  x_ph[...] = x_exp[b, i*s+py, j*s+px, c]
    x_ph = x_exp.reshape(B, Hd, s, Wd, s, C_out)
    x_ph = jnp.transpose(x_ph, (0, 2, 4, 1, 3, 5))                     # (B,s,s,Hd,Wd,C)
    x_ph = x_ph.reshape(B, s * s * Hd, Wd, C_out)

    w1_taps = jnp.transpose(w_dw.reshape(C_out, kH * kW)).astype(jnp.float32)  # (k*k,Cout)
    w2_t = jnp.transpose(w_pw.reshape(C_out, C_out)).astype(jnp.float32)       # (Cout,Cout)
    # fold the depthwise bias through the 1x1 conv:  (dw+b1)@W2ᵀ+b2 = dw@W2ᵀ + (b1@W2ᵀ+b2)
    b_fused = (b_dw.reshape(1, C_out).astype(jnp.float32) @ w2_t
               + b_pw.reshape(1, C_out).astype(jnp.float32))                    # (1,Cout)

    kernel = _make_kernel(Ho, Wo, C_out, kH, kW, s, Hd)

    out = pl.pallas_call(
        kernel,
        out_shape=jax.ShapeDtypeStruct((B, Ho * Wo, C_out), jnp.float32),
        grid=(B,),
        in_specs=[
            pl.BlockSpec((None, s * s * Hd, Wd, C_out), lambda b: (b, 0, 0, 0)),  # x
            pl.BlockSpec((kH * kW, C_out), lambda b: (0, 0)),                     # dw W
            pl.BlockSpec((C_out, C_out), lambda b: (0, 0)),                       # 1x1 Wᵀ
            pl.BlockSpec((1, C_out), lambda b: (0, 0)),                           # fused b
        ],
        out_specs=pl.BlockSpec((None, Ho * Wo, C_out), lambda b: (b, 0, 0)),
        compiler_params=pltpu.CompilerParams(
            dimension_semantics=("parallel",)),
    )(x_ph, w1_taps, w2_t, b_fused)

    # (B, Ho*Wo, Cout) -> NCHW
    return jnp.transpose(out.reshape(B, Ho, Wo, C_out), (0, 3, 1, 2))


def depthwise_conv2d_reference(x, w_dw, b_dw, w_pw, b_pw, *, padding, stride):
    """Pure-JAX reference mirroring the PyTorch module exactly."""
    C_in = x.shape[1]
    y = jax.lax.conv_general_dilated(
        x, w_dw, window_strides=(stride, stride),
        padding=((padding, padding), (padding, padding)),
        dimension_numbers=("NCHW", "OIHW", "NCHW"),
        feature_group_count=C_in)
    y = y + b_dw.reshape(1, -1, 1, 1)
    z = jax.lax.conv_general_dilated(
        y, w_pw, window_strides=(1, 1), padding="VALID",
        dimension_numbers=("NCHW", "OIHW", "NCHW"))
    return z + b_pw.reshape(1, -1, 1, 1)


if __name__ == "__main__":
    # PiT pooling-layer configuration at small shapes:
    # batch=2, dim_in=4, dim_out=8 (doubled), spatial 16x16, k=3, pad=1, stride=2.
    B, C_IN, H, W = 2, 4, 16, 16
    C_OUT = 2 * C_IN
    K, PAD, STRIDE = 3, 1, 2

    key = jax.random.PRNGKey(0)
    kx, k1, kb1, k2, kb2 = jax.random.split(key, 5)

    x = jax.random.normal(kx, (B, C_IN, H, W), dtype=jnp.float32)

    # Deterministic synthetic params (mimic nn.Conv2d uniform bounds).
    lim1 = 1.0 / ((1 * K * K) ** 0.5)
    w_dw = jax.random.uniform(k1, (C_OUT, 1, K, K), jnp.float32, -lim1, lim1)
    b_dw = jax.random.uniform(kb1, (C_OUT,), jnp.float32, -lim1, lim1)
    lim2 = 1.0 / (C_OUT ** 0.5)
    w_pw = jax.random.uniform(k2, (C_OUT, C_OUT, 1, 1), jnp.float32, -lim2, lim2)
    b_pw = jax.random.uniform(kb2, (C_OUT,), jnp.float32, -lim2, lim2)

    y = depthwise_conv2d_forward(x, w_dw, b_dw, w_pw, b_pw,
                                 kernel_size=K, padding=PAD, stride=STRIDE)
    y = jax.block_until_ready(y)

    y_ref = depthwise_conv2d_reference(x, w_dw, b_dw, w_pw, b_pw,
                                       padding=PAD, stride=STRIDE)
    Ho = (H + 2 * PAD - K) // STRIDE + 1
    Wo = (W + 2 * PAD - K) // STRIDE + 1
    assert y.shape == (B, C_OUT, Ho, Wo)
    assert jnp.allclose(y, y_ref, atol=1e-4, rtol=1e-4), "mismatch vs JAX reference"

    print("KERNEL_OK")
</pallas_src>

<mosaic_0001>
module attributes {stable_mosaic.version = 11 : i64} {
  func.func @kernel(%arg0: i32, %arg1: memref<1x36x9x8xf32, #tpu.memory_space<vmem>>, %arg2: memref<9x8xf32, #tpu.memory_space<vmem>>, %arg3: memref<8x8xf32, #tpu.memory_space<vmem>>, %arg4: memref<1x8xf32, #tpu.memory_space<vmem>>, %arg5: memref<1x64x8xf32, #tpu.memory_space<vmem>>) attributes {dimension_semantics = [#tpu.dimension_semantics<parallel>], iteration_bounds = array<i64: 2>, scalar_prefetch = 0 : i64, scratch_operands = 0 : i64, tpu.core_type = #tpu.core_type<tc>, window_params = [{transform_indices = @transform_0, window_bounds = array<i64: 1, 36, 9, 8>}, {pipeline_mode = #tpu.pipeline_mode<synchronous>, transform_indices = @transform_1, window_bounds = array<i64: 9, 8>}, {pipeline_mode = #tpu.pipeline_mode<synchronous>, transform_indices = @transform_2, window_bounds = array<i64: 8, 8>}, {pipeline_mode = #tpu.pipeline_mode<synchronous>, transform_indices = @transform_3, window_bounds = array<i64: 1, 8>}, {transform_indices = @transform_4, window_bounds = array<i64: 1, 64, 8>}]} {
    %c0 = arith.constant 0 : index
    %c0_0 = arith.constant 0 : index
    %0 = vector.load %arg2[%c0, %c0_0] : memref<9x8xf32, #tpu.memory_space<vmem>>, vector<9x8xf32>
    %cst = arith.constant 0.000000e+00 : f32
    %1 = vector.broadcast %cst : f32 to vector<8x8x8xf32>
    %c0_1 = arith.constant 0 : index
    %c0_2 = arith.constant 0 : index
    %c0_3 = arith.constant 0 : index
    %c0_4 = arith.constant 0 : index
    %2 = vector.load %arg1[%c0_1, %c0_2, %c0_3, %c0_4] : memref<1x36x9x8xf32, #tpu.memory_space<vmem>>, vector<1x8x8x8xf32>
    %3 = vector.shape_cast %2 : vector<1x8x8x8xf32> to vector<8x8x8xf32>
    %4 = vector.extract_strided_slice %0 {offsets = [0, 0], sizes = [1, 8], strides = [1, 1]} : vector<9x8xf32> to vector<1x8xf32>
    %5 = vector.shape_cast %4 : vector<1x8xf32> to vector<8xf32>
    %6 = vector.shape_cast %5 : vector<8xf32> to vector<1x1x8xf32>
    %7 = vector.broadcast %6 : vector<1x1x8xf32> to vector<8x8x8xf32>
    %8 = arith.mulf %3, %7 : vector<8x8x8xf32>
    %9 = arith.addf %1, %8 : vector<8x8x8xf32>
    %c0_5 = arith.constant 0 : index
    %c9 = arith.constant 9 : index
    %c0_6 = arith.constant 0 : index
    %c0_7 = arith.constant 0 : index
    %10 = vector.load %arg1[%c0_5, %c9, %c0_6, %c0_7] : memref<1x36x9x8xf32, #tpu.memory_space<vmem>>, vector<1x8x8x8xf32>
    %11 = vector.shape_cast %10 : vector<1x8x8x8xf32> to vector<8x8x8xf32>
    %12 = vector.extract_strided_slice %0 {offsets = [1, 0], sizes = [1, 8], strides = [1, 1]} : vector<9x8xf32> to vector<1x8xf32>
    %13 = vector.shape_cast %12 : vector<1x8xf32> to vector<8xf32>
    %14 = vector.shape_cast %13 : vector<8xf32> to vector<1x1x8xf32>
    %15 = vector.broadcast %14 : vector<1x1x8xf32> to vector<8x8x8xf32>
    %16 = arith.mulf %11, %15 : vector<8x8x8xf32>
    %17 = arith.addf %9, %16 : vector<8x8x8xf32>
    %c0_8 = arith.constant 0 : index
    %c0_9 = arith.constant 0 : index
    %c1 = arith.constant 1 : index
    %c0_10 = arith.constant 0 : index
    %18 = vector.load %arg1[%c0_8, %c0_9, %c1, %c0_10] : memref<1x36x9x8xf32, #tpu.memory_space<vmem>>, vector<1x8x8x8xf32>
    %19 = vector.shape_cast %18 : vector<1x8x8x8xf32> to vector<8x8x8xf32>
    %20 = vector.extract_strided_slice %0 {offsets = [2, 0], sizes = [1, 8], strides = [1, 1]} : vector<9x8xf32> to vector<1x8xf32>
    %21 = vector.shape_cast %20 : vector<1x8xf32> to vector<8xf32>
    %22 = vector.shape_cast %21 : vector<8xf32> to vector<1x1x8xf32>
    %23 = vector.broadcast %22 : vector<1x1x8xf32> to vector<8x8x8xf32>
    %24 = arith.mulf %19, %23 : vector<8x8x8xf32>
    %25 = arith.addf %17, %24 : vector<8x8x8xf32>
    %c0_11 = arith.constant 0 : index
    %c18 = arith.constant 18 : index
    %c0_12 = arith.constant 0 : index
    %c0_13 = arith.constant 0 : index
    %26 = vector.load %arg1[%c0_11, %c18, %c0_12, %c0_13] : memref<1x36x9x8xf32, #tpu.memory_space<vmem>>, vector<1x8x8x8xf32>
    %27 = vector.shape_cast %26 : vector<1x8x8x8xf32> to vector<8x8x8xf32>
    %28 = vector.extract_strided_slice %0 {offsets = [3, 0], sizes = [1, 8], strides = [1, 1]} : vector<9x8xf32> to vector<1x8xf32>
    %29 = vector.shape_cast %28 : vector<1x8xf32> to vector<8xf32>
    %30 = vector.shape_cast %29 : vector<8xf32> to vector<1x1x8xf32>
    %31 = vector.broadcast %30 : vector<1x1x8xf32> to vector<8x8x8xf32>
    %32 = arith.mulf %27, %31 : vector<8x8x8xf32>
    %33 = arith.addf %25, %32 : vector<8x8x8xf32>
    %c0_14 = arith.constant 0 : index
    %c27 = arith.constant 27 : index
    %c0_15 = arith.constant 0 : index
    %c0_16 = arith.constant 0 : index
    %34 = vector.load %arg1[%c0_14, %c27, %c0_15, %c0_16] : memref<1x36x9x8xf32, #tpu.memory_space<vmem>>, vector<1x8x8x8xf32>
    %35 = vector.shape_cast %34 : vector<1x8x8x8xf32> to vector<8x8x8xf32>
    %36 = vector.extract_strided_slice %0 {offsets = [4, 0], sizes = [1, 8], strides = [1, 1]} : vector<9x8xf32> to vector<1x8xf32>
    %37 = vector.shape_cast %36 : vector<1x8xf32> to vector<8xf32>
    %38 = vector.shape_cast %37 : vector<8xf32> to vector<1x1x8xf32>
    %39 = vector.broadcast %38 : vector<1x1x8xf32> to vector<8x8x8xf32>
    %40 = arith.mulf %35, %39 : vector<8x8x8xf32>
    %41 = arith.addf %33, %40 : vector<8x8x8xf32>
    %c0_17 = arith.constant 0 : index
    %c18_18 = arith.constant 18 : index
    %c1_19 = arith.constant 1 : index
    %c0_20 = arith.constant 0 : index
    %42 = vector.load %arg1[%c0_17, %c18_18, %c1_19, %c0_20] : memref<1x36x9x8xf32, #tpu.memory_space<vmem>>, vector<1x8x8x8xf32>
    %43 = vector.shape_cast %42 : vector<1x8x8x8xf32> to vector<8x8x8xf32>
    %44 = vector.extract_strided_slice %0 {offsets = [5, 0], sizes = [1, 8], strides = [1, 1]} : vector<9x8xf32> to vector<1x8xf32>
    %45 = vector.shape_cast %44 : vector<1x8xf32> to vector<8xf32>
    %46 = vector.shape_cast %45 : vector<8xf32> to vector<1x1x8xf32>
    %47 = vector.broadcast %46 : vector<1x1x8xf32> to vector<8x8x8xf32>
    %48 = arith.mulf %43, %47 : vector<8x8x8xf32>
    %49 = arith.addf %41, %48 : vector<8x8x8xf32>
    %c0_21 = arith.constant 0 : index
    %c1_22 = arith.constant 1 : index
    %c0_23 = arith.constant 0 : index
    %c0_24 = arith.constant 0 : index
    %50 = vector.load %arg1[%c0_21, %c1_22, %c0_23, %c0_24] : memref<1x36x9x8xf32, #tpu.memory_space<vmem>>, vector<1x8x8x8xf32>
    %51 = vector.shape_cast %50 : vector<1x8x8x8xf32> to vector<8x8x8xf32>
    %52 = vector.extract_strided_slice %0 {offsets = [6, 0], sizes = [1, 8], strides = [1, 1]} : vector<9x8xf32> to vector<1x8xf32>
    %53 = vector.shape_cast %52 : vector<1x8xf32> to vector<8xf32>
    %54 = vector.shape_cast %53 : vector<8xf32> to vector<1x1x8xf32>
    %55 = vector.broadcast %54 : vector<1x1x8xf32> to vector<8x8x8xf32>
    %56 = arith.mulf %51, %55 : vector<8x8x8xf32>
    %57 = arith.addf %49, %56 : vector<8x8x8xf32>
    %c0_25 = arith.constant 0 : index
    %c10 = arith.constant 10 : index
    %c0_26 = arith.constant 0 : index
    %c0_27 = arith.constant 0 : index
    %58 = vector.load %arg1[%c0_25, %c10, %c0_26, %c0_27] : memref<1x36x9x8xf32, #tpu.memory_space<vmem>>, vector<1x8x8x8xf32>
    %59 = vector.shape_cast %58 : vector<1x8x8x8xf32> to vector<8x8x8xf32>
    %60 = vector.extract_strided_slice %0 {offsets = [7, 0], sizes = [1, 8], strides = [1, 1]} : vector<9x8xf32> to vector<1x8xf32>
    %61 = vector.shape_cast %60 : vector<1x8xf32> to vector<8xf32>
    %62 = vector.shape_cast %61 : vector<8xf32> to vector<1x1x8xf32>
    %63 = vector.broadcast %62 : vector<1x1x8xf32> to vector<8x8x8xf32>
    %64 = arith.mulf %59, %63 : vector<8x8x8xf32>
    %65 = arith.addf %57, %64 : vector<8x8x8xf32>
    %c0_28 = arith.constant 0 : index
    %c1_29 = arith.constant 1 : index
    %c1_30 = arith.constant 1 : index
    %c0_31 = arith.constant 0 : index
    %66 = vector.load %arg1[%c0_28, %c1_29, %c1_30, %c0_31] : memref<1x36x9x8xf32, #tpu.memory_space<vmem>>, vector<1x8x8x8xf32>
    %67 = vector.shape_cast %66 : vector<1x8x8x8xf32> to vector<8x8x8xf32>
    %68 = vector.extract_strided_slice %0 {offsets = [8, 0], sizes = [1, 8], strides = [1, 1]} : vector<9x8xf32> to vector<1x8xf32>
    %69 = vector.shape_cast %68 : vector<1x8xf32> to vector<8xf32>
    %70 = vector.shape_cast %69 : vector<8xf32> to vector<1x1x8xf32>
    %71 = vector.broadcast %70 : vector<1x1x8xf32> to vector<8x8x8xf32>
    %72 = arith.mulf %67, %71 : vector<8x8x8xf32>
    %73 = arith.addf %65, %72 : vector<8x8x8xf32>
    %74 = vector.shape_cast %73 : vector<8x8x8xf32> to vector<64x8xf32>
    %c0_32 = arith.constant 0 : index
    %c0_33 = arith.constant 0 : index
    %75 = vector.load %arg3[%c0_32, %c0_33] : memref<8x8xf32, #tpu.memory_space<vmem>>, vector<8x8xf32>
    %cst_34 = arith.constant dense<0.000000e+00> : vector<64x8xf32>
    %76 = tpu.matmul %74, %75, %cst_34 {dimension_numbers = #tpu.dot_dimension_numbers<[1], [0], [0], [1], [0, 0, 1, 1], [], []>} : vector<64x8xf32>, vector<8x8xf32>, vector<64x8xf32> -> vector<64x8xf32>
    %c0_35 = arith.constant 0 : index
    %c0_36 = arith.constant 0 : index
    %77 = vector.load %arg4[%c0_35, %c0_36] : memref<1x8xf32, #tpu.memory_space<vmem>>, vector<1x8xf32>
    %78 = vector.broadcast %77 : vector<1x8xf32> to vector<64x8xf32>
    %79 = arith.addf %76, %78 : vector<64x8xf32>
    %c0_37 = arith.constant 0 : index
    %c0_38 = arith.constant 0 : index
    %c0_39 = arith.constant 0 : index
    %80 = vector.load %arg5[%c0_37, %c0_38, %c0_39] : memref<1x64x8xf32, #tpu.memory_space<vmem>>, vector<1x64x8xf32>
    %81 = vector.shape_cast %80 : vector<1x64x8xf32> to vector<64x8xf32>
    %82 = vector.shape_cast %79 : vector<64x8xf32> to vector<1x64x8xf32>
    tpu.vector_store %arg5[%c0_37, %c0_38, %c0_39], %82 {strides = array<i32>} : memref<1x64x8xf32, #tpu.memory_space<vmem>>, vector<1x64x8xf32>,
    return
  }
  func.func @transform_0(%arg0: i32) -> (i32, i32, i32, i32) {
    %c0_i32 = arith.constant 0 : i32
    %c0_i32_0 = arith.constant 0 : i32
    %c0_i32_1 = arith.constant 0 : i32
    %c0_i32_2 = arith.constant 0 : i32
    return %arg0, %c0_i32, %c0_i32_0, %c0_i32_1 : i32, i32, i32, i32
  }
  func.func @transform_1(%arg0: i32) -> (i32, i32) {
    %c0_i32 = arith.constant 0 : i32
    %c0_i32_0 = arith.constant 0 : i32
    %c0_i32_1 = arith.constant 0 : i32
    return %c0_i32, %c0_i32_0 : i32, i32
  }
  func.func @transform_2(%arg0: i32) -> (i32, i32) {
    %c0_i32 = arith.constant 0 : i32
    %c0_i32_0 = arith.constant 0 : i32
    %c0_i32_1 = arith.constant 0 : i32
    return %c0_i32, %c0_i32_0 : i32, i32
  }
  func.func @transform_3(%arg0: i32) -> (i32, i32) {
    %c0_i32 = arith.constant 0 : i32
    %c0_i32_0 = arith.constant 0 : i32
    %c0_i32_1 = arith.constant 0 : i32
    return %c0_i32, %c0_i32_0 : i32, i32
  }
  func.func @transform_4(%arg0: i32) -> (i32, i32, i32) {
    %c0_i32 = arith.constant 0 : i32
    %c0_i32_0 = arith.constant 0 : i32
    %c0_i32_1 = arith.constant 0 : i32
    return %arg0, %c0_i32, %c0_i32_0 : i32, i32, i32
  }
}

</mosaic_0001>

<bundles_post_ra>
// kernel: tpu_custom_call.1
= control target key start
LH: loop header
LB: loop body
LE: loop exit
PB: predicated region body
PF: predicated region fallthrough
CT: control target
= control target key end

     0   :  { %s802_s15 = smov 0   ;;  %s1006_s0 = inlined_call_operand.vmem [shape: f32[2,36,9,8], index: 0, kind: input, shape index: {}]   ;;  %s1007_s1 = inlined_call_operand.vmem [shape: f32[9,8], index: 1, kind: input, shape index: {}]   ;;  %s1008_s2 = inlined_call_operand.vmem [shape: f32[8,8], index: 2, kind: input, shape index: {}]   ;;  %s1009_s3 = inlined_call_operand.vmem [shape: f32[1,8], index: 3, kind: input, shape index: {}]   ;;  %s1010_s4 = inlined_call_operand.vmem [shape: f32[2,64,8], index: 4, kind: output, shape index: {}]  }
   0x1 LB: > { %s658_s16 = sadd.s32 4294967295, %s775_s15   ;;  %p662_p0 = scmp.ge.s32.totalorder %s775_s15, 1  ;;  %s775_s15 = sphi %s802_s15, %s14_s15  }
   0x2   : > { %p162_p1 = scmp.lt.s32.totalorder %s775_s15, 3 }
   0x4   : > { %p163_p2 = pnand %p662_p0, %p162_p1 }
   0x5   : > { %v457_v0 = vld [vmem:[%s1008_s2] sm:$0xff] (!%p163_p2)  ;;  %p188_p3 = scmp.lt.s32.totalorder (!%p163_p2), %s658_s16, 1  ;;  %v208_v1 = vlaneseq (!%p163_p2)  ;;  %v844_v22 = vld [vmem:[%s1007_s1 + $0x8] ss:$0 sm:$0xff] (!%p163_p2)  ;;  %vm465_vm0 = vcmask (!%p163_p2), 64512  }
   0x6   : > { %166 = sbr.rel (%p163_p2) target bundleno = 279 (0x117), region = 36  ;;  %744 = vmatprep.subr.mxu0 (!%p163_p2), %v457_v0  ;;  %758 = vmatprep.subr.mxu1 (!%p163_p2), %v457_v0  ;;  %v198_v3 = vld [vmem:[%s1007_s1] sm:$0xff] (!%p163_p2) }
   0x7   : > { %745 = vmatpush3.msra.mxu0 (!%p163_p2), %v457_v0  ;;  %759 = vmatpush3.msra.mxu1 (!%p163_p2), %v457_v0  ;;  %v209_v2 = vshrl.u32 (!%p163_p2), %v208_v1, 7 }
   0x9   : > { %v210_v4 = vsub.s32 (!%p163_p2), 0, %v209_v2  ;;  %v239_v5 = vsub.s32 (!%p163_p2), 1, %v209_v2  ;;  %v267_v6 = vsub.s32 (!%p163_p2), 2, %v209_v2  ;;  %v296_v7 = vsub.s32 (!%p163_p2), 3, %v209_v2 }
   0xa   : > { %v325_v8 = vsub.s32 (!%p163_p2), 4, %v209_v2  ;;  %v353_v9 = vsub.s32 (!%p163_p2), 5, %v209_v2  ;;  %v382_v10 = vsub.s32 (!%p163_p2), 6, %v209_v2  ;;  %v411_v11 = vsub.s32 (!%p163_p2), 7, %v209_v2 }
   0xb   : > { %v824_v12 = vrot.slane (!%p163_p2), %v198_v3, %v210_v4  ;;  %v826_v13 = vrot.slane (!%p163_p2), %v198_v3, %v239_v5  ;;  %v828_v14 = vrot.slane (!%p163_p2), %v198_v3, %v267_v6  ;;  %v830_v15 = vrot.slane (!%p163_p2), %v198_v3, %v296_v7 }
   0xc   : > { %v835_v19 = vrot.slane (!%p163_p2), %v198_v3, %v325_v8  ;;  %v837_v20 = vrot.slane (!%p163_p2), %v198_v3, %v353_v9  ;;  %v839_v21 = vrot.slane (!%p163_p2), %v198_v3, %v382_v10  ;;  %v852_v29 = vrot.slane (!%p163_p2), %v198_v3, %v411_v11 }
   0xd   : > { %s1012_s16 = smov (!%p188_p3, %s658_s16), 1 }
   0xe   : > { %s760_s21 = smul.u32 576, %s1012_s16  ;;  %s734_s27 = sshll.u32 %s1012_s16, 6 }
   0xf   : > { %s197_s6 = scalar_lea.vmem %s1010_s4, %s734_s27 }
  0x10   : > { %s822_s24 = scalar_lea.vmem %s1006_s0, %s760_s21 }
  0x11   : > { %v200_v16 = vld [vmem:[%s822_s24] sm:$0xff]  ;;  %v666_v17 = vld [vmem:[%s822_s24 + $0x90] sm:$0xff] }
  0x12   : > { %v257_v18 = vld [vmem:[%s822_s24 + $0x1] sm:$0xff]  ;;  %v212_v23 = vmul.f32 %v824_v12, %v200_v16  ;;  %v241_v24 = vmul.f32 %v666_v17, %v826_v13  ;;  %v682_v27 = vld [vmem:[%s822_s24 + $0x1b0] sm:$0xff] }
  0x13   : > { %v269_v25 = vmul.f32 %v828_v14, %v257_v18  ;;  %v674_v26 = vld [vmem:[%s822_s24 + $0x120] sm:$0xff]  ;;  %v698_v30 = vld [vmem:[%s822_s24 + $0x10] sm:$0xff]  ;;  %v327_v35 = vmul.f32 %v682_v27, %v835_v19 }
  0x14   : > { %v690_v28 = vld [vmem:[%s822_s24 + $0x121] sm:$0xff]  ;;  %v714_v32 = vld [vmem:[%s822_s24 + $0x11] sm:$0xff]  ;;  %v249_v33 = vadd.f32 %v241_v24, %v212_v23  ;;  %v298_v34 = vmul.f32 %v674_v26, %v830_v15  ;;  %v384_v47 = vmul.f32 %v698_v30, %v839_v21  ;;  %v213_v49 = vmul.f32 %v698_v30, %v824_v12 }
  0x15   : > { %v706_v31 = vld [vmem:[%s822_s24 + $0xa0] sm:$0xff]  ;;  %v863_v37 = vld [vmem:[%s822_s24 + $0xd0] sm:$0xff]  ;;  %v355_v39 = vmul.f32 %v690_v28, %v837_v20  ;;  %v441_v50 = vmul.f32 %v844_v22, %v714_v32  ;;  %v270_v62 = vmul.f32 %v714_v32, %v828_v14 }
  0x16   : > { %v860_v36 = vld [vmem:[%s822_s24 + $0x40] sm:$0xff]  ;;  %v245_v41 = vmul.f32 %v863_v37, %v826_v13  ;;  %v686_v44 = vld [vmem:[%s822_s24 + $0x1f0] sm:$0xff]  ;;  %v277_v46 = vadd.f32 %v269_v25, %v249_v33  ;;  %v413_v48 = vmul.f32 %v706_v31, %v852_v29  ;;  %v242_v61 = vmul.f32 %v706_v31, %v826_v13 }
  0x17   : > { %v866_v38 = vld [vmem:[%s822_s24 + $0x41] sm:$0xff]  ;;  %v216_v40 = vmul.f32 %v824_v12, %v860_v36  ;;  %v331_v53 = vmul.f32 %v686_v44, %v835_v19  ;;  %v675_v54 = vld [vmem:[%s822_s24 + $0x130] sm:$0xff] }
  0x18   : > { %v273_v42 = vmul.f32 %v828_v14, %v866_v38  ;;  %v678_v43 = vld [vmem:[%s822_s24 + $0x160] sm:$0xff]  ;;  %v306_v56 = vadd.f32 %v298_v34, %v277_v46  ;;  %v702_v58 = vld [vmem:[%s822_s24 + $0x50] sm:$0xff]  ;;  %v250_v5 = vadd.f32 %v242_v61, %v213_v49  ;;  %v299_v6 = vmul.f32 %v675_v54, %v830_v15 }
  0x19   : > { %v694_v45 = vld [vmem:[%s822_s24 + $0x161] sm:$0xff]  ;;  %v253_v51 = vadd.f32 %v245_v41, %v216_v40  ;;  %v302_v52 = vmul.f32 %v678_v43, %v830_v15  ;;  %v718_v60 = vld [vmem:[%s822_s24 + $0x51] sm:$0xff]  ;;  %v388_v0 = vmul.f32 %v702_v58, %v839_v21  ;;  %v217_v11 = vmul.f32 %v702_v58, %v824_v12 }
  0x1a   : > { %v683_v55 = vld [vmem:[%s822_s24 + $0x1c0] sm:$0xff]  ;;  %v359_v57 = vmul.f32 %v694_v45, %v837_v20  ;;  %v445_v2 = vmul.f32 %v844_v22, %v718_v60  ;;  %v691_v3 = vld [vmem:[%s822_s24 + $0x131] sm:$0xff]  ;;  %v335_v4 = vadd.f32 %v327_v35, %v306_v56  ;;  %v274_v17 = vmul.f32 %v718_v60, %v828_v14 }
  0x1b   : > { %v710_v59 = vld [vmem:[%s822_s24 + $0xe0] sm:$0xff]  ;;  %v281_v63 = vadd.f32 %v273_v42, %v253_v51  ;;  %v328_v7 = vmul.f32 %v683_v55, %v835_v19  ;;  %v679_v8 = vld [vmem:[%s822_s24 + $0x170] sm:$0xff]  ;;  %v278_v24 = vadd.f32 %v270_v62, %v250_v5  ;;  %v356_v25 = vmul.f32 %v691_v3, %v837_v20 }
  0x1c   : > { %v417_v1 = vmul.f32 %v710_v59, %v852_v29  ;;  %v699_v10 = vld [vmem:[%s822_s24 + $0x20] sm:$0xff]  ;;  %v246_v16 = vmul.f32 %v710_v59, %v826_v13  ;;  %v363_v23 = vadd.f32 %v355_v39, %v335_v4  ;;  %v707_v27 = vld [vmem:[%s822_s24 + $0xb0] sm:$0xff]  ;;  %v303_v33 = vmul.f32 %v679_v8, %v830_v15 }
  0x1d   : > { %v310_v9 = vadd.f32 %v302_v52, %v281_v63  ;;  %v687_v18 = vld [vmem:[%s822_s24 + $0x200] sm:$0xff]  ;;  %v385_v26 = vmul.f32 %v699_v10, %v839_v21  ;;  %v414_v30 = vmul.f32 %v707_v27, %v852_v29  ;;  %v695_v34 = vld [vmem:[%s822_s24 + $0x171] sm:$0xff]  ;;  %v307_v40 = vadd.f32 %v299_v6, %v278_v24 }
  0x1e   : > { %v715_v31 = vld [vmem:[%s822_s24 + $0x21] sm:$0xff]  ;;  %v254_v32 = vadd.f32 %v246_v16, %v217_v11  ;;  %v392_v35 = vadd.f32 %v384_v47, %v363_v23  ;;  %v332_v41 = vmul.f32 %v687_v18, %v835_v19  ;;  %v214_v45 = vmul.f32 %v699_v10, %v824_v12  ;;  %v711_v58 = vld [vmem:[%s822_s24 + $0xf0] sm:$0xff] }
  0x1f   : > { %v339_v28 = vadd.f32 %v331_v53, %v310_v9  ;;  %v442_v39 = vmul.f32 %v844_v22, %v715_v31  ;;  %v676_v42 = vld [vmem:[%s822_s24 + $0x140] sm:$0xff]  ;;  %v243_v46 = vmul.f32 %v707_v27, %v826_v13  ;;  %v336_v51 = vadd.f32 %v328_v7, %v307_v40  ;;  %v684_v53 = vld [vmem:[%s822_s24 + $0x1d0] sm:$0xff] }
  0x20   : > { %v282_v44 = vadd.f32 %v274_v17, %v254_v32  ;;  %v421_v49 = vadd.f32 %v413_v48, %v392_v35  ;;  %v360_v47 = vmul.f32 %v695_v34, %v837_v20  ;;  %v271_v52 = vmul.f32 %v715_v31, %v828_v14  ;;  %v703_v56 = vld [vmem:[%s822_s24 + $0x60] sm:$0xff]  ;;  %v688_v18 = vld [vmem:[%s822_s24 + $0x210] sm:$0xff] }
  0x21   : > { %v367_v43 = vadd.f32 %v359_v57, %v339_v28  ;;  %v251_v59 = vadd.f32 %v243_v46, %v214_v45  ;;  %v300_v57 = vmul.f32 %v676_v42, %v830_v15  ;;  %v692_v60 = vld [vmem:[%s822_s24 + $0x141] sm:$0xff]  ;;  %v364_v62 = vadd.f32 %v356_v25, %v336_v51  ;;  %v700_v24 = vld [vmem:[%s822_s24 + $0x30] sm:$0xff] }
  0x22   : > { %v311_v55 = vadd.f32 %v303_v33, %v282_v44  ;;  %v449_v61 = vadd.f32 %v441_v50, %v421_v49  ;;  %v389_v48 = vmul.f32 %v703_v56, %v839_v21  ;;  %v418_v63 = vmul.f32 %v711_v58, %v852_v29  ;;  %v719_v3 = vld [vmem:[%s822_s24 + $0x61] sm:$0xff]  ;;  %v716_v33 = vld [vmem:[%s822_s24 + $0x31] sm:$0xff] }
  0x23   : > { %v396_v54 = vadd.f32 %v388_v0, %v367_v43  ;;  %v279_v0 = vadd.f32 %v271_v52, %v251_v59  ;;  %v329_v6 = vmul.f32 %v684_v53, %v835_v19  ;;  %v680_v7 = vld [vmem:[%s822_s24 + $0x180] sm:$0xff]  ;;  %v393_v8 = vadd.f32 %v385_v26, %v364_v62  ;;  %v677_v42 = vld [vmem:[%s822_s24 + $0x150] sm:$0xff] }
  0x24   : > { %v340_v5 = vadd.f32 %v332_v41, %v311_v55  ;;  %746 = vmatprep.mubr.msk.f32.mxu0 %vm465_vm0, %v449_v61  ;;  %v357_v50 = vmul.f32 %v692_v60, %v837_v20  ;;  %v218_v9 = vmul.f32 %v703_v56, %v824_v12  ;;  %v247_v10 = vmul.f32 %v711_v58, %v826_v13  ;;  %v708_v25 = vld [vmem:[%s822_s24 + $0xc0] sm:$0xff]  ;;  %v704_v52 = vld [vmem:[%s822_s24 + $0x70] sm:$0xff] }
  0x25   : > { %v425_v4 = vadd.f32 %v417_v1, %v396_v54  ;;  %v308_v16 = vadd.f32 %v300_v57, %v279_v0  ;;  %v275_v17 = vmul.f32 %v719_v3, %v828_v14  ;;  %v422_v23 = vadd.f32 %v414_v30, %v393_v8  ;;  %v696_v34 = vld [vmem:[%s822_s24 + $0x181] sm:$0xff]  ;;  %v720_v58 = vld [vmem:[%s822_s24 + $0x71] sm:$0xff] }
  0x26   : > { %v368_v1 = vadd.f32 %v360_v47, %v340_v5  ;;  %v255_v27 = vadd.f32 %v247_v10, %v218_v9  ;;  %v304_v26 = vmul.f32 %v680_v7, %v830_v15  ;;  %v446_v31 = vmul.f32 %v844_v22, %v719_v3  ;;  %v685_v49 = vld [vmem:[%s822_s24 + $0x1e0] sm:$0xff]  ;;  %v693_v60 = vld [vmem:[%s822_s24 + $0x151] sm:$0xff] }
  0x27   : > { %v453_v11 = vadd.f32 %v445_v2, %v425_v4  ;;  %v337_v2 = vadd.f32 %v329_v6, %v308_v16  ;;  %v386_v32 = vmul.f32 %v700_v24, %v839_v21  ;;  %v450_v30 = vadd.f32 %v442_v39, %v422_v23  ;;  %v712_v53 = vld [vmem:[%s822_s24 + $0x100] sm:$0xff] }
  0x28   : > { %v397_v28 = vadd.f32 %v389_v48, %v368_v1  ;;  %v415_v35 = vmul.f32 %v708_v25, %v852_v29  ;;  %v283_v40 = vadd.f32 %v275_v17, %v255_v27  ;;  %v333_v41 = vmul.f32 %v688_v18, %v835_v19  ;;  %v689_v9 = vld [vmem:[%s822_s24 + $0x220] sm:$0xff]  ;;  %v697_v18 = vld [vmem:[%s822_s24 + $0x191] sm:$0xff] }
  0x29   : > { %752 = vmatprep.mubr.msk.f32.mxu1 %vm465_vm0, %v453_v11  ;;  %v365_v44 = vadd.f32 %v357_v50, %v337_v2  ;;  %v215_v45 = vmul.f32 %v700_v24, %v824_v12  ;;  %v244_v46 = vmul.f32 %v708_v25, %v826_v13  ;;  %747 = vmatmul.mubr.msk.f32.vlgmr.msra.gmra.mrb[0].mxu0 %vm465_vm0, %v450_v30  ;;  %v705_v27 = vld [vmem:[%s822_s24 + $0x80] sm:$0xff] }
  0x2a   : > { %v426_v43 = vadd.f32 %v418_v63, %v397_v28  ;;  %v443_v39 = vmul.f32 %v844_v22, %v716_v33  ;;  %v312_v51 = vadd.f32 %v304_v26, %v283_v40  ;;  %v361_v47 = vmul.f32 %v696_v34, %v837_v20  ;;  %v681_v63 = vld [vmem:[%s822_s24 + $0x190] sm:$0xff] }
  0x2b   : > { %v272_v54 = vmul.f32 %v716_v33, %v828_v14  ;;  %v394_v56 = vadd.f32 %v386_v32, %v365_v44  ;;  %v252_v59 = vadd.f32 %v244_v46, %v215_v45  ;;  %v301_v57 = vmul.f32 %v677_v42, %v830_v15  ;;  %v713_v32 = vld [vmem:[%s822_s24 + $0x110] sm:$0xff] }
  0x2c   : > { %v454_v55 = vadd.f32 %v446_v31, %v426_v43  ;;  %v341_v61 = vadd.f32 %v333_v41, %v312_v51  ;;  %v390_v62 = vmul.f32 %v704_v52, %v839_v21  ;;  %v330_v48 = vmul.f32 %v685_v49, %v835_v19 }
  0x2d   : > { %v423_v3 = vadd.f32 %v415_v35, %v394_v56  ;;  %v280_v4 = vadd.f32 %v272_v54, %v252_v59  ;;  %v219_v5 = vmul.f32 %v704_v52, %v824_v12  ;;  %v248_v0 = vmul.f32 %v712_v53, %v826_v13 }
  0x2e   : > { %753 = vmatmul.mubr.msk.f32.vlgmr.msra.gmra.mrb[0].mxu1 %vm465_vm0, %v454_v55  ;;  %v369_v6 = vadd.f32 %v361_v47, %v341_v61  ;;  %v419_v7 = vmul.f32 %v712_v53, %v852_v29  ;;  %v358_v8 = vmul.f32 %v693_v60, %v837_v20  ;;  %v276_v50 = vmul.f32 %v720_v58, %v828_v14 }
  0x2f   : > { %v451_v10 = vadd.f32 %v443_v39, %v423_v3  ;;  %v309_v11 = vadd.f32 %v301_v57, %v280_v4  ;;  %v256_v1 = vadd.f32 %v248_v0, %v219_v5  ;;  %v305_v16 = vmul.f32 %v681_v63, %v830_v15 }
  0x30   : > { %v398_v17 = vadd.f32 %v390_v62, %v369_v6  ;;  %v447_v12 = vmul.f32 %v844_v22, %v720_v58  ;;  %v387_v23 = vmul.f32 %v839_v21, %v860_v36  ;;  %v334_v14 = vmul.f32 %v689_v9, %v835_v19  ;;  %v721_v19 = vld [vmem:[%s822_s24 + $0x81] sm:$0xff] }
  0x31   : > { %749 = vmatprep.mubr.msk.f32.mxu0 %vm465_vm0, %v451_v10  ;;  %v338_v13 = vadd.f32 %v330_v48, %v309_v11  ;;  %v284_v24 = vadd.f32 %v276_v50, %v256_v1  ;;  %v416_v15 = vmul.f32 %v863_v37, %v852_v29  ;;  %v362_v31 = vmul.f32 %v697_v18, %v837_v20 }
  0x32   : > { %v427_v25 = vadd.f32 %v419_v7, %v398_v17  ;;  %v444_v36 = vmul.f32 %v844_v22, %v866_v38  ;;  %v391_v30 = vmul.f32 %v705_v27, %v839_v21  ;;  %v420_v37 = vmul.f32 %v713_v32, %v852_v29  ;;  %v723_v21 = vld [vmem:[%s1009_s3] ss:$0 sm:$0xff] }
  0x33   : > { %v366_v26 = vadd.f32 %v358_v8, %v338_v13  ;;  %v313_v28 = vadd.f32 %v305_v16, %v284_v24  ;;  %v448_v20 = vmul.f32 %v844_v22, %v721_v19 }
  0x34   : > { %v455_v2 = vadd.f32 %v447_v12, %v427_v25 }
  0x35   : > { %v395_v33 = vadd.f32 %v387_v23, %v366_v26  ;;  %v342_v34 = vadd.f32 %v334_v14, %v313_v28 }
  0x36   : > { %755 = vmatprep.mubr.msk.f32.mxu1 %vm465_vm0, %v455_v2 }
  0x37   : > { %v424_v35 = vadd.f32 %v416_v15, %v395_v33  ;;  %v370_v40 = vadd.f32 %v362_v31, %v342_v34 }
  0x39   : > { %v452_v41 = vadd.f32 %v444_v36, %v424_v35  ;;  %v399_v42 = vadd.f32 %v391_v30, %v370_v40 }
  0x3b   : > { %750 = vmatmul.mubr.msk.f32.gmra.mrb[2].mxu0 %vm465_vm0, %v452_v41  ;;  %v428_v43 = vadd.f32 %v420_v37, %v399_v42 }
  0x3d   : > { %v456_v44 = vadd.f32 %v448_v20, %v428_v43 }
  0x3f   : > { %756 = vmatmul.mubr.msk.f32.gmra.mrb[2].mxu1 %vm465_vm0, %v456_v44 }
  0xfc   : > { %v748_v29 = vpop.f32.mrb[0].mxu0 }
  0xfd   : > { %v562_v38 = vadd.f32 %v748_v29, %v723_v21  ;;  %v556_v45 = vpop.f32.mrb[1].mxu0 }
  0xfe   : > { %v557_v46 = vadd.f32 %v723_v21, %v556_v45 }
  0xff   : > { %596 = vst.msk [vmem:[%s197_s6 + $0x8] sm:$0xff] %vm465_vm0, %v562_v38 }
 0x100   : > { %595 = vst.msk [vmem:[%s197_s6] sm:$0xff] %vm465_vm0, %v557_v46 }
 0x101   : > { %v754_v22 = vpop.f32.mrb[0].mxu1 }
 0x102   : > { %v582_v49 = vadd.f32 %v754_v22, %v723_v21  ;;  %v576_v39 = vpop.f32.mrb[1].mxu1 }
 0x103   : > { %v577_v51 = vadd.f32 %v723_v21, %v576_v39 }
 0x104   : > { %600 = vst.msk [vmem:[%s197_s6 + $0x28] sm:$0xff] %vm465_vm0, %v582_v49 }
 0x105   : > { %599 = vst.msk [vmem:[%s197_s6 + $0x20] sm:$0xff] %vm465_vm0, %v577_v51 }
 0x10e   : > { %v751_v47 = vpop.f32.mrb[2].mxu0 }
 0x10f   : > { %v572_v52 = vadd.f32 %v751_v47, %v723_v21  ;;  %v566_v53 = vpop.f32.mrb[3].mxu0 }
 0x110   : > { %v567_v54 = vadd.f32 %v723_v21, %v566_v53 }
 0x111   : > { %598 = vst.msk [vmem:[%s197_s6 + $0x18] sm:$0xff] %vm465_vm0, %v572_v52 }
 0x112   : > { %v757_v55 = vpop.f32.mrb[2].mxu1  ;;  %597 = vst.msk [vmem:[%s197_s6 + $0x10] sm:$0xff] %vm465_vm0, %v567_v54 }
 0x113   : > { %v592_v56 = vadd.f32 %v757_v55, %v723_v21  ;;  %v586_v58 = vpop.f32.mrb[3].mxu1 }
 0x114   : > { %v587_v59 = vadd.f32 %v723_v21, %v586_v58 }
 0x115   : > { %602 = vst.msk [vmem:[%s197_s6 + $0x38] sm:$0xff] %vm465_vm0, %v592_v56 }
 0x116   : > { %601 = vst.msk [vmem:[%s197_s6 + $0x30] sm:$0xff] %vm465_vm0, %v587_v59 }
 0x117 PF: > { %s14_s15 = sadd.s32 1, %s775_s15  }
 0x118   : > { %p11_p4 = scmp.ge.s32.totalorder %s14_s15, 4  }
 0x11a   :  { %13 = sbr.rel (!%p11_p4) target bundleno = 1 (0x1), region = 71 }

</bundles_post_ra>
